<compile_context>
chip_gen: v6e
topology: v6e:2x2x1
jax: 0.10.0
libtpu: 0.0.40
codegen_flags: <defaults>
</compile_context>

<pallas_src>
import functools

import jax
import jax.numpy as jnp
from jax import lax
from jax.experimental import pallas as pl
from jax.experimental.pallas import tpu as pltpu


# ------------------------------- helpers ------------------------------------

def _round_up(x, m):
    return (x + m - 1) // m * m


def _cdiv(a, b):
    return (a + b - 1) // b


def _sublane(dtype):
    # second-to-last dim granularity of the native vreg tiling
    return {4: 8, 2: 16, 1: 32}.get(jnp.dtype(dtype).itemsize, 8)


def _vmem_capacity():
    try:
        info = pltpu.get_tpu_info()
        for attr in ("vmem_capacity_bytes", "vmem_size_bytes", "vmem_bytes"):
            v = getattr(info, attr, None)
            if v:
                return int(v)
    except Exception:
        pass
    return 64 << 20  # conservative (v7x-sized); 128 MiB parts just lose headroom


def _vmem_needed(tm, tn, tk, xb, wb, ob, mb, use_scratch):
    # double-buffered x/w/out (+mask) tiles, plus optional f32 accumulator
    need = 2 * (tm * tk * xb + tn * tk * wb) + 2 * tm * tn * (ob + mb)
    if use_scratch:
        need += tm * tn * 4
    return need


def _pick_tiles(M, N, K, x_dtype, w_dtype, out_dtype, mask_dtype, vmem_cap):
    sl = max(_sublane(x_dtype), _sublane(out_dtype),
             _sublane(mask_dtype) if mask_dtype is not None else 8)
    big_vmem = vmem_cap >= (96 << 20)          # 128 MiB parts (v5e/v6e) vs v7x (64 MiB)
    tm_cap = 1024 if big_vmem else 512
    tn_cap = 2048 if big_vmem else 1024
    tk_cap = 2048 if M <= 256 else 512         # skinny-M: fewer, wider K steps

    tm = min(tm_cap, _round_up(M, sl))
    tn = min(tn_cap, _round_up(N, 128))
    # Megacore guard: for skinny-M shapes keep >= 2 programs on the parallel N axis.
    if _cdiv(M, tm) == 1 and _cdiv(N, tn) < 2 and N > 256:
        tn = _round_up(_cdiv(N, 2), 128)
    # Single K step (no tail handling) whenever the whole K fits one tile.
    tk = K if _round_up(K, 128) <= tk_cap else tk_cap

    xb, wb, ob = (jnp.dtype(d).itemsize for d in (x_dtype, w_dtype, out_dtype))
    mb = jnp.dtype(mask_dtype).itemsize if mask_dtype is not None else 0
    use_scratch = jnp.dtype(out_dtype) != jnp.dtype(jnp.float32)
    budget = max(vmem_cap - (12 << 20), 16 << 20)
    for _ in range(8):                          # safety net; rarely triggers
        if _vmem_needed(tm, tn, tk, xb, wb, ob, mb, use_scratch) <= budget:
            break
        if tn > 256:
            tn = _round_up(tn // 2, 128)
        elif tm > 2 * sl:
            tm = _round_up(tm // 2, sl)
        elif tk != K and tk > 256:
            tk = _round_up(tk // 2, 128)
        else:
            break
    return tm, tn, tk


# ------------------------------- kernel -------------------------------------

def _linear_kernel(*refs, has_mask, acc_in_out, k_rem, mxu_dtype):
    """o = (x @ w.T) [* mask], K-accumulated in f32.

    refs layout: x, w, [mask], o, [acc scratch]   (static flags select variants)
    """
    it = iter(refs)
    x_ref = next(it)
    w_ref = next(it)
    m_ref = next(it) if has_mask else None
    o_ref = next(it)
    acc_ref = o_ref if acc_in_out else next(it)

    k = pl.program_id(2)
    nk = pl.num_programs(2)

    @pl.when(k == 0)
    def _():
        acc_ref[...] = jnp.zeros_like(acc_ref)

    x = x_ref[...]
    w = w_ref[...]
    if k_rem:
        # Ragged-K tail: zero both operands' out-of-bounds lanes so no garbage
        # (possibly NaN) from the partial block reaches the accumulator.
        valid = jnp.where(k == nk - 1, k_rem, x.shape[1])
        x = jnp.where(lax.broadcasted_iota(jnp.int32, x.shape, 1) < valid, x, 0)
        w = jnp.where(lax.broadcasted_iota(jnp.int32, w.shape, 1) < valid, w, 0)
    if mxu_dtype is not None:
        # In-kernel operand cast (default bf16 for f32 inputs): full MXU rate
        # without a wrapper-side HBM cast pass.
        x = x.astype(mxu_dtype)
        w = w.astype(mxu_dtype)

    acc_ref[...] += lax.dot_general(
        x, w,
        dimension_numbers=(((1,), (1,)), ((), ())),   # torch (out,in) layout
        preferred_element_type=jnp.float32)

    if has_mask or not acc_in_out:
        @pl.when(k == nk - 1)
        def _():
            res = acc_ref[...]
            if has_mask:
                res = res * m_ref[...].astype(jnp.float32)
            o_ref[...] = res.astype(o_ref.dtype)


# ------------------------------- pallas wrapper ------------------------------

@functools.partial(
    jax.jit,
    static_argnames=("tm", "tn", "tk", "out_dtype", "mxu_dtype", "vmem_cap"))
def _linear_pallas(x2d, w, mask2d, *, tm, tn, tk, out_dtype, mxu_dtype, vmem_cap):
    """x2d: (M, K); w: (N, K) torch layout; mask2d: (M, N) or None."""
    M, K = x2d.shape
    N = w.shape[0]
    gm, gn, gk = _cdiv(M, tm), _cdiv(N, tn), _cdiv(K, tk)
    k_rem = K % tk                      # 0 => no in-kernel K-tail masking

    has_mask = mask2d is not None
    acc_in_out = jnp.dtype(out_dtype) == jnp.dtype(jnp.float32)

    xb = jnp.dtype(x2d.dtype).itemsize
    wb = jnp.dtype(w.dtype).itemsize
    ob = jnp.dtype(out_dtype).itemsize
    mb = jnp.dtype(mask2d.dtype).itemsize if has_mask else 0

    vmem_needed = _vmem_needed(tm, tn, tk, xb, wb, ob, mb, not acc_in_out)
    vmem_limit = int(max(min(max(vmem_needed + (8 << 20), 32 << 20),
                             vmem_cap - (8 << 20)),
                         vmem_needed))
    compiler_params = pltpu.CompilerParams(
        dimension_semantics=("parallel", "parallel", "arbitrary"),
        vmem_limit_bytes=vmem_limit)

    # Actual traffic: x streams once per N-tile, w once per M-tile.
    cost = pl.CostEstimate(
        flops=2 * M * N * K,
        transcendentals=0,
        bytes_accessed=int(M * K * xb * gn + N * K * wb * gm + M * N * (ob + mb)))

    in_specs = [pl.BlockSpec((tm, tk), lambda i, j, k: (i, k)),
                pl.BlockSpec((tn, tk), lambda i, j, k: (j, k))]  # torch (out,in)
    operands = [x2d, w]
    if has_mask:
        in_specs.append(pl.BlockSpec((tm, tn), lambda i, j, k: (i, j)))
        operands.append(mask2d)
    out_spec = pl.BlockSpec((tm, tn), lambda i, j, k: (i, j))
    scratch = [] if acc_in_out else [pltpu.VMEM((tm, tn), jnp.float32)]

    kernel = functools.partial(_linear_kernel, has_mask=has_mask,
                               acc_in_out=acc_in_out, k_rem=k_rem,
                               mxu_dtype=mxu_dtype)

    return pl.pallas_call(
        kernel,
        out_shape=jax.ShapeDtypeStruct((M, N), out_dtype),
        grid_spec=pltpu.PrefetchScalarGridSpec(
            num_scalar_prefetch=0,
            grid=(gm, gn, gk),
            in_specs=in_specs,
            out_specs=out_spec,
            scratch_shapes=scratch),
        compiler_params=compiler_params,
        cost_estimate=cost,
    )(*operands)


def linear_forward(x, weight, mask=None, *, compute_dtype=None,
                   tm=None, tn=None, tk=None):
    """Linearlayer.forward: x @ weight.T, optionally * mask.

    x       : (..., in_features)
    weight  : (out_features, in_features)  -- torch Linear layout (NOT transposed)
    mask    : broadcastable to (..., out_features), or None
    compute_dtype : MXU operand dtype.  Default: bf16 when operands are f32
        (f32 accumulation, output keeps x.dtype).  Pass jnp.float32 to opt out.
    """
    *lead, K = x.shape
    N, Kw = weight.shape
    assert K == Kw, f"in_features mismatch: x has {K}, weight has {Kw}"
    out_dtype = jnp.dtype(x.dtype)

    x2d = x.reshape(-1, K)
    M = x2d.shape[0]

    # MXU operand dtype (cast happens inside the kernel -> no extra HBM pass).
    if compute_dtype is None:
        mxu_dtype = "bfloat16" if out_dtype == jnp.dtype(jnp.float32) else None
    else:
        cd = jnp.dtype(compute_dtype)
        same = (cd == jnp.dtype(x.dtype)) and (cd == jnp.dtype(weight.dtype))
        mxu_dtype = None if same else cd.name

    # Mask: keep floating masks in their own dtype (no bf16 rounding); promote
    # bool/int masks exactly to f32.  The multiply itself runs in f32.
    mask2d = None
    mask_dtype = None
    if mask is not None:
        m = jnp.asarray(mask)
        if not jnp.issubdtype(m.dtype, jnp.floating):
            m = m.astype(jnp.float32)
        mask2d = jnp.broadcast_to(m, (*lead, N)).reshape(-1, N)
        mask_dtype = mask2d.dtype

    vmem_cap = _vmem_capacity()
    atm, atn, atk = _pick_tiles(M, N, K, x2d.dtype, weight.dtype, out_dtype,
                                mask_dtype, vmem_cap)
    sl = max(_sublane(x2d.dtype), _sublane(out_dtype),
             _sublane(mask_dtype) if mask_dtype is not None else 8)
    tm = atm if tm is None else (tm if tm == M else _round_up(tm, sl))
    tn = atn if tn is None else (tn if tn == N else _round_up(tn, 128))
    tk = atk if tk is None else (tk if tk == K else _round_up(tk, 128))

    out = _linear_pallas(x2d, weight, mask2d, tm=tm, tn=tn, tk=tk,
                         out_dtype=out_dtype, mxu_dtype=mxu_dtype,
                         vmem_cap=vmem_cap)
    return out.reshape(*lead, N)


# ----------------------------------- main -----------------------------------

if __name__ == "__main__":
    key = jax.random.PRNGKey(0)
    ks = jax.random.split(key, 8)

    def reference(x, w, mask=None):
        y = jnp.einsum("...k,nk->...n", x, w,
                       precision=jax.lax.Precision.HIGHEST)
        return y if mask is None else y * mask

    # Case 1: aligned shapes, no mask, exact f32 MXU path (opt out of bf16).
    b, s, din, dout = 2, 8, 128, 256
    x = jax.random.normal(ks[0], (b, s, din), jnp.float32)
    w = jax.random.normal(ks[1], (dout, din), jnp.float32) * 0.05
    y = jax.block_until_ready(linear_forward(x, w, compute_dtype=jnp.float32))
    assert y.shape == (b, s, dout)
    assert jnp.allclose(y, reference(x, w), atol=2e-3, rtol=2e-3)

    # Case 2: ragged M/N/K (not multiples of 8/128) + fused mask, exact path.
    b2, s2, din2, dout2 = 2, 7, 96, 200
    x2 = jax.random.normal(ks[2], (b2, s2, din2), jnp.float32)
    w2 = jax.random.normal(ks[3], (dout2, din2), jnp.float32) * 0.05
    m2 = (jax.random.uniform(ks[4], (b2, s2, dout2)) > 0.5).astype(jnp.float32)
    y2 = jax.block_until_ready(
        linear_forward(x2, w2, mask=m2, compute_dtype=jnp.float32))
    assert y2.shape == (b2, s2, dout2)
    assert jnp.allclose(y2, reference(x2, w2, m2), atol=2e-3, rtol=2e-3)

    # Case 3: default path (bf16 MXU operands cast in-kernel, f32 accumulation).
    y3 = jax.block_until_ready(linear_forward(x, w))
    assert jnp.allclose(y3, reference(x, w), atol=5e-2, rtol=5e-2)

    # Case 4: bf16 inputs/outputs -> f32 VMEM scratch-accumulator variant.
    y4 = jax.block_until_ready(
        linear_forward(x.astype(jnp.bfloat16), w.astype(jnp.bfloat16)))
    assert y4.dtype == jnp.bfloat16
    assert jnp.allclose(y4.astype(jnp.float32), reference(x, w),
                        atol=6e-2, rtol=6e-2)

    # Case 5: multi-step K with a ragged tail -> in-kernel K-tail masking.
    b5, din5, dout5 = 4, 1100, 160
    x5 = jax.random.normal(ks[5], (1, b5, din5), jnp.float32)
    w5 = jax.random.normal(ks[6], (dout5, din5), jnp.float32) * 0.05
    y5 = jax.block_until_ready(
        linear_forward(x5, w5, compute_dtype=jnp.float32, tk=512))
    assert y5.shape == (1, b5, dout5)
    assert jnp.allclose(y5, reference(x5, w5), atol=5e-3, rtol=5e-3)

    print("KERNEL_OK")
</pallas_src>

<mosaic_0001>
module attributes {stable_mosaic.version = 11 : i64} {
  func.func @_linear_kernel(%arg0: i32, %arg1: i32, %arg2: i32, %arg3: memref<16x128xf32, #tpu.memory_space<vmem>>, %arg4: memref<256x128xf32, #tpu.memory_space<vmem>>, %arg5: memref<16x256xf32, #tpu.memory_space<vmem>>) attributes {dimension_semantics = [#tpu.dimension_semantics<parallel>, #tpu.dimension_semantics<parallel>, #tpu.dimension_semantics<arbitrary>], iteration_bounds = array<i64: 1, 1, 1>, scalar_prefetch = 0 : i64, scratch_operands = 0 : i64, tpu.core_type = #tpu.core_type<tc>, window_params = [{transform_indices = @transform_0, window_bounds = array<i64: 16, 128>}, {transform_indices = @transform_1, window_bounds = array<i64: 256, 128>}, {transform_indices = @transform_2, window_bounds = array<i64: 16, 256>}]} {
    %c0_i32 = arith.constant 0 : i32
    %0 = arith.cmpi eq, %arg2, %c0_i32 : i32
    %1 = arith.extui %0 : i1 to i32
    %c0_i32_0 = arith.constant 0 : i32
    %2 = arith.cmpi ne, %1, %c0_i32_0 : i32
    scf.if %2 {
      %cst_8 = arith.constant 0.000000e+00 : f32
      %9 = vector.broadcast %cst_8 : f32 to vector<16x256xf32>
      %c0_9 = arith.constant 0 : index
      %c0_10 = arith.constant 0 : index
      %10 = vector.load %arg5[%c0_9, %c0_10] : memref<16x256xf32, #tpu.memory_space<vmem>>, vector<16x256xf32>
      tpu.vector_store %arg5[%c0_9, %c0_10], %9 {strides = array<i32>} : memref<16x256xf32, #tpu.memory_space<vmem>>, vector<16x256xf32>,
    } else {
    }
    %c0 = arith.constant 0 : index
    %c0_1 = arith.constant 0 : index
    %3 = vector.load %arg3[%c0, %c0_1] : memref<16x128xf32, #tpu.memory_space<vmem>>, vector<16x128xf32>
    %c0_2 = arith.constant 0 : index
    %c0_3 = arith.constant 0 : index
    %4 = vector.load %arg4[%c0_2, %c0_3] : memref<256x128xf32, #tpu.memory_space<vmem>>, vector<256x128xf32>
    %c0_4 = arith.constant 0 : index
    %c0_5 = arith.constant 0 : index
    %5 = vector.load %arg5[%c0_4, %c0_5] : memref<16x256xf32, #tpu.memory_space<vmem>>, vector<16x256xf32>
    %cst = arith.constant dense<0.000000e+00> : vector<16x256xf32>
    %6 = tpu.matmul %3, %4, %cst {dimension_numbers = #tpu.dot_dimension_numbers<[1], [1], [0], [0], [0, 0, 1, 0], [], []>} : vector<16x128xf32>, vector<256x128xf32>, vector<16x256xf32> -> vector<16x256xf32>
    %7 = arith.addf %5, %6 : vector<16x256xf32>
    %c0_6 = arith.constant 0 : index
    %c0_7 = arith.constant 0 : index
    %8 = vector.load %arg5[%c0_6, %c0_7] : memref<16x256xf32, #tpu.memory_space<vmem>>, vector<16x256xf32>
    tpu.vector_store %arg5[%c0_6, %c0_7], %7 {strides = array<i32>} : memref<16x256xf32, #tpu.memory_space<vmem>>, vector<16x256xf32>,
    return
  }
  func.func @transform_0(%arg0: i32, %arg1: i32, %arg2: i32) -> (i32, i32) {
    %c0_i32 = arith.constant 0 : i32
    return %arg0, %arg2 : i32, i32
  }
  func.func @transform_1(%arg0: i32, %arg1: i32, %arg2: i32) -> (i32, i32) {
    %c0_i32 = arith.constant 0 : i32
    return %arg1, %arg2 : i32, i32
  }
  func.func @transform_2(%arg0: i32, %arg1: i32, %arg2: i32) -> (i32, i32) {
    %c0_i32 = arith.constant 0 : i32
    return %arg0, %arg1 : i32, i32
  }
}

</mosaic_0001>

<bundles_post_ra>
// kernel: _linear_pallas.1
= control target key start
LH: loop header
LB: loop body
LE: loop exit
PB: predicated region body
PF: predicated region fallthrough
CT: control target
= control target key end

     0   :  { %7 = vsyncpa [#allocation3], 0  ;;  %s370_s0 = inlined_call_operand.hbm [shape: f32[16,128], index: 0, kind: input, shape index: {}]   ;;  %s371_s1 = inlined_call_operand.hbm [shape: f32[256,128], index: 1, kind: input, shape index: {}]   ;;  %s372_s2 = inlined_call_operand.hbm [shape: f32[16,256], index: 2, kind: output, shape index: {}]  }
   0x1   :  { %8 = vsyncpa [#allocation6], 0 }
   0x2   :  { %9 = vsyncpa [#allocation4], 0  ;;  %s331_s9 = smov [#allocation2]  }
   0x3   :  { %s15_s10 = sshll.u32 %s331_s9, 4  ;;  %s16_s10 = int_to_ptr.vmem [resolvable:$true] %s15_s10 }
   0x4   :  { %s273_s11 = scalar_lea.vmem %s16_s10, 256  ;;  %p278_p1 = scmp.lt.s32.totalorder %s16_s10, %s16_s10 }
   0x5   :  { %p274_p0 = scmp.ne.s32.totalorder %s16_s10, %s273_s11  ;;  %p279_p2 = scmp.lt.s32.totalorder %s273_s11, %s273_s11 }
   0x7   :  { %p280_p3 = por %p279_p2, %p278_p1 }
   0x9   :  { %p281_p4 = pnand %p280_p3, %p274_p0 }
   0xb   :  { %284 = shalt.err (!%p281_p4)
}
   0xc   :  { %s332_s12 = smov 128   ;;  %s333_s13 = smov 8  }
   0xd   :  { %21 = dma.hbm_to_vmem [thread:$0]  %s370_s0, 256, %s16_s10, [#allocation3], %s332_s12, %s332_s12, %s333_s13  }
   0xe   :  { %s334_s16 = smov [#allocation5]  }
   0xf   :  { %s27_s17 = sshll.u32 %s334_s16, 4  ;;  %s28_s17 = int_to_ptr.vmem [resolvable:$true] %s27_s17 }
  0x10   :  { %s293_s18 = scalar_lea.vmem %s28_s17, 4096  ;;  %p298_p6 = scmp.lt.s32.totalorder %s28_s17, %s28_s17 }
  0x11   :  { %p294_p5 = scmp.ne.s32.totalorder %s28_s17, %s293_s18  ;;  %p299_p7 = scmp.lt.s32.totalorder %s293_s18, %s293_s18 }
  0x13   :  { %p300_p8 = por %p299_p7, %p298_p6 }
  0x15   :  { %p301_p9 = pnand %p300_p8, %p294_p5 }
  0x17   :  { %304 = shalt.err (!%p301_p9)
}
  0x18   :  { %33 = dma.hbm_to_vmem [thread:$0]  %s371_s1, 4096, %s28_s17, [#allocation6], %s332_s12, %s332_s12, %s333_s13  }
  0x19   :  { %325 = dma.done.wait [#allocation3], 256  }
  0x1a   :  { %326 = vsyncadd [#allocation3], 4294967040 }
  0x1b   :  { %327 = dma.done.wait [#allocation6], 4096  }
  0x1c   :  { %328 = vsyncadd [#allocation6], 4294963200  ;;  %v81_v0 = vld [vmem:[#allocation5 + $0xf8] sm:$0xff]  ;;  %v80_v2 = vld [vmem:[#allocation5 + $0xf0] sm:$0xff]  ;;  %s335_s0 = smov [#allocation7]  }
  0x1d   :  { %v65_v1 = vld [vmem:[#allocation5 + $0x78] sm:$0xff]  ;;  %189 = vmatprep.subr.mxu0 %v81_v0  ;;  %225 = vmatprep.subr.mxu1 %v81_v0  ;;  %v64_v3 = vld [vmem:[#allocation5 + $0x70] sm:$0xff]  ;;  %v79_v4 = vld [vmem:[#allocation5 + $0xe8] sm:$0xff]  ;;  %s176_s1 = sshll.u32 %s335_s0, 4  ;;  %s177_s1 = int_to_ptr.vmem [resolvable:$true] %s176_s1 }
  0x1e   :  { %190 = vmatpush3.xpose.msra.mxu0 %v65_v1  ;;  %241 = vmatpush3.xpose.msra.mxu1 %v65_v1  ;;  %v63_v5 = vld [vmem:[#allocation5 + $0x68] sm:$0xff]  ;;  %v78_v6 = vld [vmem:[#allocation5 + $0xe0] sm:$0xff]  ;;  %v359_v7 = vld [vmem:[#allocation2] sm:$0xff]  ;;  %s305_s21 = scalar_lea.vmem %s177_s1, 512  ;;  %p310_p11 = scmp.lt.s32.totalorder %s177_s1, %s177_s1 }
  0x1f   :  { %191 = vmatprep.subr.mxu0 %v80_v2  ;;  %226 = vmatprep.subr.mxu1 %v80_v2  ;;  %v62_v8 = vld [vmem:[#allocation5 + $0x60] sm:$0xff]  ;;  %v361_v9 = vld [vmem:[#allocation2 + $0x8] sm:$0xff]  ;;  %v76_v12 = vld [vmem:[#allocation5 + $0xd0] sm:$0xff]  ;;  %p306_p10 = scmp.ne.s32.totalorder %s177_s1, %s305_s21  ;;  %p311_p12 = scmp.lt.s32.totalorder %s305_s21, %s305_s21 }
  0x20   :  { %v77_v10 = vld [vmem:[#allocation5 + $0xd8] sm:$0xff]  ;;  %221 = vmatprep.mubr.f32.mxu0 %v359_v7  ;;  %223 = vmatprep.mubr.f32.mxu1 %v361_v9  ;;  %v60_v13 = vld [vmem:[#allocation5 + $0x50] sm:$0xff]  ;;  %v75_v14 = vld [vmem:[#allocation5 + $0xc8] sm:$0xff] }
  0x21   :  { %v61_v11 = vld [vmem:[#allocation5 + $0x58] sm:$0xff]  ;;  %v59_v15 = vld [vmem:[#allocation5 + $0x48] sm:$0xff]  ;;  %v74_v16 = vld [vmem:[#allocation5 + $0xc0] sm:$0xff]  ;;  %p312_p13 = por %p311_p12, %p310_p11 }
  0x22   :  { %192 = vmatpush3.xpose.msra.mxu0 %v64_v3  ;;  %242 = vmatpush3.xpose.msra.mxu1 %v64_v3  ;;  %v58_v17 = vld [vmem:[#allocation5 + $0x40] sm:$0xff]  ;;  %v73_v18 = vld [vmem:[#allocation5 + $0xb8] sm:$0xff]  ;;  %v72_v20 = vld [vmem:[#allocation5 + $0xb0] sm:$0xff] }
  0x23   :  { %193 = vmatprep.subr.mxu0 %v79_v4  ;;  %227 = vmatprep.subr.mxu1 %v79_v4  ;;  %v57_v19 = vld [vmem:[#allocation5 + $0x38] sm:$0xff]  ;;  %v56_v21 = vld [vmem:[#allocation5 + $0x30] sm:$0xff]  ;;  %v71_v22 = vld [vmem:[#allocation5 + $0xa8] sm:$0xff]  ;;  %p313_p0 = pnand %p312_p13, %p306_p10 }
  0x24   :  { %v55_v23 = vld [vmem:[#allocation5 + $0x28] sm:$0xff]  ;;  %v70_v24 = vld [vmem:[#allocation5 + $0xa0] sm:$0xff]  ;;  %v69_v26 = vld [vmem:[#allocation5 + $0x98] sm:$0xff] }
  0x25   :  { %v54_v25 = vld [vmem:[#allocation5 + $0x20] sm:$0xff]  ;;  %v53_v27 = vld [vmem:[#allocation5 + $0x18] sm:$0xff]  ;;  %v68_v28 = vld [vmem:[#allocation5 + $0x90] sm:$0xff] }
  0x26   :  { %194 = vmatpush3.xpose.msra.mxu0 %v63_v5  ;;  %243 = vmatpush3.xpose.msra.mxu1 %v63_v5  ;;  %v52_v29 = vld [vmem:[#allocation5 + $0x10] sm:$0xff]  ;;  %v67_v30 = vld [vmem:[#allocation5 + $0x88] sm:$0xff]  ;;  %v66_v32 = vld [vmem:[#allocation5 + $0x80] sm:$0xff] }
  0x27   :  { %195 = vmatprep.subr.mxu0 %v78_v6  ;;  %228 = vmatprep.subr.mxu1 %v78_v6  ;;  %v51_v31 = vld [vmem:[#allocation5 + $0x8] sm:$0xff]  ;;  %v50_v33 = vld [vmem:[#allocation5] sm:$0xff] }
  0x2a   :  { %196 = vmatpush3.xpose.msra.mxu0 %v62_v8  ;;  %244 = vmatpush3.xpose.msra.mxu1 %v62_v8 }
  0x2b   :  { %197 = vmatprep.subr.mxu0 %v77_v10  ;;  %229 = vmatprep.subr.mxu1 %v77_v10 }
  0x2e   :  { %198 = vmatpush3.xpose.msra.mxu0 %v61_v11  ;;  %245 = vmatpush3.xpose.msra.mxu1 %v61_v11 }
  0x2f   :  { %199 = vmatprep.subr.mxu0 %v76_v12  ;;  %230 = vmatprep.subr.mxu1 %v76_v12 }
  0x32   :  { %200 = vmatpush3.xpose.msra.mxu0 %v60_v13  ;;  %246 = vmatpush3.xpose.msra.mxu1 %v60_v13 }
  0x33   :  { %201 = vmatprep.subr.mxu0 %v75_v14  ;;  %231 = vmatprep.subr.mxu1 %v75_v14 }
  0x36   :  { %202 = vmatpush3.xpose.msra.mxu0 %v59_v15  ;;  %247 = vmatpush3.xpose.msra.mxu1 %v59_v15 }
  0x37   :  { %203 = vmatprep.subr.mxu0 %v74_v16  ;;  %232 = vmatprep.subr.mxu1 %v74_v16 }
  0x3a   :  { %204 = vmatpush3.xpose.msra.mxu0 %v58_v17  ;;  %248 = vmatpush3.xpose.msra.mxu1 %v58_v17 }
  0x3b   :  { %205 = vmatprep.subr.mxu0 %v73_v18  ;;  %233 = vmatprep.subr.mxu1 %v73_v18 }
  0x3e   :  { %206 = vmatpush3.xpose.msra.mxu0 %v57_v19  ;;  %249 = vmatpush3.xpose.msra.mxu1 %v57_v19 }
  0x3f   :  { %207 = vmatprep.subr.mxu0 %v72_v20  ;;  %234 = vmatprep.subr.mxu1 %v72_v20 }
  0x42   :  { %208 = vmatpush3.xpose.msra.mxu0 %v56_v21  ;;  %250 = vmatpush3.xpose.msra.mxu1 %v56_v21 }
  0x43   :  { %209 = vmatprep.subr.mxu0 %v71_v22  ;;  %235 = vmatprep.subr.mxu1 %v71_v22 }
  0x46   :  { %210 = vmatpush3.xpose.msra.mxu0 %v55_v23  ;;  %251 = vmatpush3.xpose.msra.mxu1 %v55_v23 }
  0x47   :  { %211 = vmatprep.subr.mxu0 %v70_v24  ;;  %236 = vmatprep.subr.mxu1 %v70_v24 }
  0x4a   :  { %212 = vmatpush3.xpose.msra.mxu0 %v54_v25  ;;  %252 = vmatpush3.xpose.msra.mxu1 %v54_v25 }
  0x4b   :  { %213 = vmatprep.subr.mxu0 %v69_v26  ;;  %237 = vmatprep.subr.mxu1 %v69_v26 }
  0x4e   :  { %214 = vmatpush3.xpose.msra.mxu0 %v53_v27  ;;  %253 = vmatpush3.xpose.msra.mxu1 %v53_v27 }
  0x4f   :  { %215 = vmatprep.subr.mxu0 %v68_v28  ;;  %238 = vmatprep.subr.mxu1 %v68_v28 }
  0x52   :  { %216 = vmatpush3.xpose.msra.mxu0 %v52_v29  ;;  %254 = vmatpush3.xpose.msra.mxu1 %v52_v29 }
  0x53   :  { %217 = vmatprep.subr.mxu0 %v67_v30  ;;  %239 = vmatprep.subr.mxu1 %v67_v30 }
  0x56   :  { %218 = vmatpush3.xpose.msra.mxu0 %v51_v31  ;;  %255 = vmatpush3.xpose.msra.mxu1 %v51_v31 }
  0x57   :  { %219 = vmatprep.subr.mxu0 %v66_v32  ;;  %240 = vmatprep.subr.mxu1 %v66_v32 }
  0x5a   :  { %220 = vmatpush3.xpose.msra.mxu0 %v50_v33  ;;  %256 = vmatpush3.xpose.msra.mxu1 %v50_v33 }
  0x5d   :  { %222 = vmatmul.mubr.f32.vlgmr.msra.gmra.mxu0 %v359_v7  ;;  %224 = vmatmul.mubr.f32.vlgmr.msra.gmra.mxu1 %v361_v9 }
 0x11d   :  { %v152_v34 = vpop.f32.mrf.mxu0  ;;  %v158_v35 = vpop.f32.mrf.mxu1 }
 0x11e   :  { %167 = vst [vmem:[#allocation7] sm:$0xff] %v152_v34  ;;  %169 = vst [vmem:[#allocation7 + $0x10] sm:$0xff] %v158_v35 }
 0x11f   :  { %v154_v36 = vpop.f32.mrf.mxu0  ;;  %v160_v37 = vpop.f32.mrf.mxu1 }
 0x120   :  { %168 = vst [vmem:[#allocation7 + $0x8] sm:$0xff] %v154_v36  ;;  %170 = vst [vmem:[#allocation7 + $0x18] sm:$0xff] %v160_v37 }
 0x121   :  { %316 = shalt.err (!%p313_p0)
}
 0x122   :  { %s336_s22 = smov 256   ;;  %s337_s23 = smov 16  }
 0x123   :  { %182 = dma.vmem_to_hbm [thread:$0]  %s177_s1, 512, %s372_s2, [#allocation4], %s336_s22, %s336_s22, %s337_s23  }
 0x124   :  { %329 = dma.done.wait [#allocation4], 512  }
 0x125   :  { %330 = vsyncadd [#allocation4], 4294966784 }
 0x126   :  { %186 = vsyncpa [#allocation3], 1 }
 0x127   :  { %187 = vsyncpa [#allocation6], 1 }
 0x128   :  { %188 = vsyncpa [#allocation4], 1 }

</bundles_post_ra>
